<compile_context>
chip_gen: v7x
topology: tpu7x:2x2x1
jax: 0.10.0
libtpu: 0.0.40
codegen_flags: <defaults>
</compile_context>

<pallas_src>
import jax
import jax.numpy as jnp
from jax.experimental import pallas as pl
from jax.experimental.pallas import tpu as pltpu

HIGH = jax.lax.Precision.HIGHEST


def _make_kernel(b_tile):
    def kernel(x_ref, w1_ref, b1_ref, cwb_ref, w2_ref, b2_ref, o_ref):
        # x_ref: (b_tile*64, 100) -- batch collapsed into M
        h = jnp.dot(x_ref[...], w1_ref[...],
                    preferred_element_type=jnp.float32) + b1_ref[...]        # (B*64, 32)
        h = jnp.maximum((h + 2.0) * 0.05, 0.0)                               # relu((.+2)*0.05)

        # Conv1d(64->6,k=3), valid: stack the 3 taps along the row (sublane) axis
        # -> (3*B*64, 30); one matmul with the precomputed block-diagonal weight.
        h_stack = jnp.concatenate([h[:, 0:30], h[:, 1:31], h[:, 2:32]], axis=0)
        conv = jnp.dot(cwb_ref[...], h_stack,
                       preferred_element_type=jnp.float32)                   # (B*6, 30)

        # Folded layer2+mat2 (+ conv bias folded into b2_ref)
        out = jnp.dot(conv, w2_ref[...],
                      preferred_element_type=jnp.float32) + b2_ref[...]      # (B*6, 512)
        o_ref[...] = out

    return kernel


def pack_params(w1, b1, m1, m2, cw, cb, w2, b2, b_tile):
    """Fold linear->matmul pairs and build the block-diagonal conv weight."""
    # layer1 + mat1:  (x @ W1^T + b1) @ m1  ==  x @ (W1^T @ m1) + b1 @ m1
    w1m1 = jnp.dot(w1.T, m1, precision=HIGH)                  # (100, 32)
    b1m1 = jnp.dot(b1, m1, precision=HIGH).reshape(1, 32)     # (1, 32)

    # layer2 + mat2:  (c @ W2^T + b2) @ m2  ==  c @ (W2^T @ m2) + b2 @ m2
    w2m2 = jnp.dot(w2.T, m2, precision=HIGH)                  # (30, 512)
    b2m2 = jnp.dot(b2, m2, precision=HIGH)                    # (512,)
    # conv bias cb routed through W2M2 (cb is constant along L): fused output bias
    colsum = jnp.sum(w2m2, axis=0)                            # (512,)
    b2f = cb[:, None] * colsum[None, :] + b2m2[None, :]       # (6, 512)
    b2f_tiled = jnp.tile(b2f, (b_tile, 1))                    # (b_tile*6, 512)

    # Block-diagonal conv weight:
    #   row b*6+o, col k*(b_tile*64) + b*64 + i  ->  cw[o, i, k]
    eye_b = jnp.eye(b_tile, dtype=cw.dtype)
    cw_block = jnp.concatenate(
        [jnp.kron(eye_b, cw[:, :, k]) for k in range(3)], axis=1)  # (b*6, 3*b*64)

    return (w1m1, b1m1, cw_block, w2m2, b2f_tiled)


def sample_model_forward(x, packed, b_tile):
    w1m1, b1m1, cw_block, w2m2, b2f_tiled = packed
    N, C, L = x.shape
    assert C == 64 and L == 100, (C, L)
    bt = b_tile
    n_pad = -(-N // bt) * bt
    if n_pad > bt:
        # multi-step grid: keep the output block sublane-aligned (bt*6 % 8 == 0)
        assert (bt * 6) % 8 == 0, "choose B_TILE as a multiple of 4 when N > B_TILE"

    x_flat = x.reshape(N * C, L)
    if n_pad != N:
        x_flat = jnp.concatenate(
            [x_flat, jnp.zeros(((n_pad - N) * C, L), x.dtype)], axis=0)

    out_flat = pl.pallas_call(
        _make_kernel(bt),
        out_shape=jax.ShapeDtypeStruct((n_pad * 6, 512), jnp.float32),
        grid_spec=pl.GridSpec(
            grid=(n_pad // bt,),
            in_specs=[
                pl.BlockSpec((bt * 64, 100), lambda i: (i, 0)),            # x tile
                pl.BlockSpec((100, 32), lambda i: (0, 0)),                 # W1M1
                pl.BlockSpec((1, 32), lambda i: (0, 0)),                   # b1M1
                pl.BlockSpec((bt * 6, 3 * bt * 64), lambda i: (0, 0)),     # conv block-diag W
                pl.BlockSpec((30, 512), lambda i: (0, 0)),                 # W2M2
                pl.BlockSpec((bt * 6, 512), lambda i: (0, 0)),             # fused bias (tiled)
            ],
            out_specs=pl.BlockSpec((bt * 6, 512), lambda i: (i, 0)),
        ),
        compiler_params=pltpu.CompilerParams(
            dimension_semantics=("parallel",)),
    )(x_flat, w1m1, b1m1, cw_block, w2m2, b2f_tiled)

    return out_flat.reshape(n_pad, 6, 512)[:N]


def init_params(key):
    """Deterministic synthetic parameters matching the PyTorch module shapes."""
    ks = jax.random.split(key, 9)
    w1 = jax.random.normal(ks[0], (128, 100), jnp.float32) * 0.05   # Linear(100,128)
    b1 = jax.random.normal(ks[1], (128,), jnp.float32) * 0.05
    m1 = jax.random.normal(ks[2], (128, 32), jnp.float32)
    m2 = jax.random.normal(ks[3], (64, 512), jnp.float32)
    cw = jax.random.normal(ks[4], (6, 64, 3), jnp.float32) * 0.05   # Conv1d(64,6,3)
    cb = jax.random.normal(ks[5], (6,), jnp.float32) * 0.05
    w2 = jax.random.normal(ks[6], (64, 30), jnp.float32) * 0.05     # Linear(30,64)
    b2 = jax.random.normal(ks[7], (64,), jnp.float32) * 0.05
    return w1, b1, m1, m2, cw, cb, w2, b2


def reference_forward(x, w1, b1, m1, m2, cw, cb, w2, b2):
    """Pure-JAX reference replicating the PyTorch forward (high precision)."""
    out = jnp.einsum("ncl,kl->nck", x, w1, precision=HIGH) + b1            # (N,64,128)
    out = jnp.matmul(out, m1, precision=HIGH)                              # (N,64,32)
    out = jnp.maximum((out + 2.0) * 0.05, 0.0)
    out = jax.lax.conv_general_dilated(
        out, cw, window_strides=(1,), padding="VALID",
        dimension_numbers=("NCH", "OIH", "NCH"),
        precision=HIGH) + cb[None, :, None]                                # (N,6,30)
    out = jnp.einsum("ncl,kl->nck", out, w2, precision=HIGH) + b2          # (N,6,64)
    out = jnp.matmul(out, m2, precision=HIGH)                              # (N,6,512)
    return out


if __name__ == "__main__":
    key = jax.random.PRNGKey(0)
    k_params, k_x1, k_x2 = jax.random.split(key, 3)
    w1, b1, m1, m2, cw, cb, w2, b2 = init_params(k_params)

    B_TILE = 8  # batch elements per grid step (sized well under v7x's 64 MiB VMEM)

    for kx, n in ((k_x1, 2), (k_x2, 16)):
        x = jax.random.normal(kx, (n, 64, 100), jnp.float32)
        bt = max(1, min(B_TILE, n))
        packed = pack_params(w1, b1, m1, m2, cw, cb, w2, b2, bt)
        out = jax.block_until_ready(sample_model_forward(x, packed, bt))
        ref = reference_forward(x, w1, b1, m1, m2, cw, cb, w2, b2)
        assert out.shape == (n, 6, 512), out.shape
        assert jnp.allclose(out, ref, atol=5e-3, rtol=5e-3), f"mismatch vs reference (N={n})"

    print("KERNEL_OK")
</pallas_src>

<mosaic_0001>
module attributes {stable_mosaic.version = 11 : i64} {
  func.func @kernel(%arg0: i32, %arg1: memref<128x100xf32, #tpu.memory_space<vmem>>, %arg2: memref<100x32xf32, #tpu.memory_space<vmem>>, %arg3: memref<1x32xf32, #tpu.memory_space<vmem>>, %arg4: memref<12x384xf32, #tpu.memory_space<vmem>>, %arg5: memref<30x512xf32, #tpu.memory_space<vmem>>, %arg6: memref<12x512xf32, #tpu.memory_space<vmem>>, %arg7: memref<12x512xf32, #tpu.memory_space<vmem>>) attributes {dimension_semantics = [#tpu.dimension_semantics<parallel>], iteration_bounds = array<i64: 1>, scalar_prefetch = 0 : i64, scratch_operands = 0 : i64, tpu.core_type = #tpu.core_type<tc>, window_params = [{transform_indices = @transform_0, window_bounds = array<i64: 128, 100>}, {pipeline_mode = #tpu.pipeline_mode<synchronous>, transform_indices = @transform_1, window_bounds = array<i64: 100, 32>}, {pipeline_mode = #tpu.pipeline_mode<synchronous>, transform_indices = @transform_2, window_bounds = array<i64: 1, 32>}, {pipeline_mode = #tpu.pipeline_mode<synchronous>, transform_indices = @transform_3, window_bounds = array<i64: 12, 384>}, {pipeline_mode = #tpu.pipeline_mode<synchronous>, transform_indices = @transform_4, window_bounds = array<i64: 30, 512>}, {pipeline_mode = #tpu.pipeline_mode<synchronous>, transform_indices = @transform_5, window_bounds = array<i64: 12, 512>}, {transform_indices = @transform_6, window_bounds = array<i64: 12, 512>}]} {
    %c0 = arith.constant 0 : index
    %c0_0 = arith.constant 0 : index
    %0 = vector.load %arg1[%c0, %c0_0] : memref<128x100xf32, #tpu.memory_space<vmem>>, vector<128x100xf32>
    %c0_1 = arith.constant 0 : index
    %c0_2 = arith.constant 0 : index
    %1 = vector.load %arg2[%c0_1, %c0_2] : memref<100x32xf32, #tpu.memory_space<vmem>>, vector<100x32xf32>
    %cst = arith.constant dense<0.000000e+00> : vector<128x32xf32>
    %2 = tpu.matmul %0, %1, %cst {dimension_numbers = #tpu.dot_dimension_numbers<[1], [0], [0], [1], [0, 0, 1, 1], [], []>} : vector<128x100xf32>, vector<100x32xf32>, vector<128x32xf32> -> vector<128x32xf32>
    %c0_3 = arith.constant 0 : index
    %c0_4 = arith.constant 0 : index
    %3 = vector.load %arg3[%c0_3, %c0_4] : memref<1x32xf32, #tpu.memory_space<vmem>>, vector<1x32xf32>
    %4 = vector.broadcast %3 : vector<1x32xf32> to vector<128x32xf32>
    %5 = arith.addf %2, %4 : vector<128x32xf32>
    %cst_5 = arith.constant 2.000000e+00 : f32
    %6 = vector.broadcast %cst_5 : f32 to vector<128x32xf32>
    %7 = arith.addf %5, %6 : vector<128x32xf32>
    %cst_6 = arith.constant 5.000000e-02 : f32
    %8 = vector.broadcast %cst_6 : f32 to vector<128x32xf32>
    %9 = arith.mulf %7, %8 : vector<128x32xf32>
    %cst_7 = arith.constant 0.000000e+00 : f32
    %10 = vector.broadcast %cst_7 : f32 to vector<128x32xf32>
    %11 = arith.maximumf %9, %10 : vector<128x32xf32>
    %12 = vector.extract_strided_slice %11 {offsets = [0, 0], sizes = [128, 30], strides = [1, 1]} : vector<128x32xf32> to vector<128x30xf32>
    %13 = vector.extract_strided_slice %11 {offsets = [0, 1], sizes = [128, 30], strides = [1, 1]} : vector<128x32xf32> to vector<128x30xf32>
    %14 = vector.extract_strided_slice %11 {offsets = [0, 2], sizes = [128, 30], strides = [1, 1]} : vector<128x32xf32> to vector<128x30xf32>
    %15 = tpu.concatenate %12, %13, %14 in 0 : vector<128x30xf32>, vector<128x30xf32>, vector<128x30xf32> -> vector<384x30xf32>
    %c0_8 = arith.constant 0 : index
    %c0_9 = arith.constant 0 : index
    %16 = vector.load %arg4[%c0_8, %c0_9] : memref<12x384xf32, #tpu.memory_space<vmem>>, vector<12x384xf32>
    %cst_10 = arith.constant dense<0.000000e+00> : vector<12x30xf32>
    %17 = tpu.matmul %16, %15, %cst_10 {dimension_numbers = #tpu.dot_dimension_numbers<[1], [0], [0], [1], [0, 0, 1, 1], [], []>} : vector<12x384xf32>, vector<384x30xf32>, vector<12x30xf32> -> vector<12x30xf32>
    %c0_11 = arith.constant 0 : index
    %c0_12 = arith.constant 0 : index
    %18 = vector.load %arg5[%c0_11, %c0_12] : memref<30x512xf32, #tpu.memory_space<vmem>>, vector<30x512xf32>
    %cst_13 = arith.constant dense<0.000000e+00> : vector<12x512xf32>
    %19 = tpu.matmul %17, %18, %cst_13 {dimension_numbers = #tpu.dot_dimension_numbers<[1], [0], [0], [1], [0, 0, 1, 1], [], []>} : vector<12x30xf32>, vector<30x512xf32>, vector<12x512xf32> -> vector<12x512xf32>
    %c0_14 = arith.constant 0 : index
    %c0_15 = arith.constant 0 : index
    %20 = vector.load %arg6[%c0_14, %c0_15] : memref<12x512xf32, #tpu.memory_space<vmem>>, vector<12x512xf32>
    %21 = arith.addf %19, %20 : vector<12x512xf32>
    %c0_16 = arith.constant 0 : index
    %c0_17 = arith.constant 0 : index
    %22 = vector.load %arg7[%c0_16, %c0_17] : memref<12x512xf32, #tpu.memory_space<vmem>>, vector<12x512xf32>
    tpu.vector_store %arg7[%c0_16, %c0_17], %21 {strides = array<i32>} : memref<12x512xf32, #tpu.memory_space<vmem>>, vector<12x512xf32>,
    return
  }
  func.func @transform_0(%arg0: i32) -> (i32, i32) {
    %c0_i32 = arith.constant 0 : i32
    %c0_i32_0 = arith.constant 0 : i32
    return %arg0, %c0_i32 : i32, i32
  }
  func.func @transform_1(%arg0: i32) -> (i32, i32) {
    %c0_i32 = arith.constant 0 : i32
    %c0_i32_0 = arith.constant 0 : i32
    %c0_i32_1 = arith.constant 0 : i32
    return %c0_i32, %c0_i32_0 : i32, i32
  }
  func.func @transform_2(%arg0: i32) -> (i32, i32) {
    %c0_i32 = arith.constant 0 : i32
    %c0_i32_0 = arith.constant 0 : i32
    %c0_i32_1 = arith.constant 0 : i32
    return %c0_i32, %c0_i32_0 : i32, i32
  }
  func.func @transform_3(%arg0: i32) -> (i32, i32) {
    %c0_i32 = arith.constant 0 : i32
    %c0_i32_0 = arith.constant 0 : i32
    %c0_i32_1 = arith.constant 0 : i32
    return %c0_i32, %c0_i32_0 : i32, i32
  }
  func.func @transform_4(%arg0: i32) -> (i32, i32) {
    %c0_i32 = arith.constant 0 : i32
    %c0_i32_0 = arith.constant 0 : i32
    %c0_i32_1 = arith.constant 0 : i32
    return %c0_i32, %c0_i32_0 : i32, i32
  }
  func.func @transform_5(%arg0: i32) -> (i32, i32) {
    %c0_i32 = arith.constant 0 : i32
    %c0_i32_0 = arith.constant 0 : i32
    %c0_i32_1 = arith.constant 0 : i32
    return %c0_i32, %c0_i32_0 : i32, i32
  }
  func.func @transform_6(%arg0: i32) -> (i32, i32) {
    %c0_i32 = arith.constant 0 : i32
    %c0_i32_0 = arith.constant 0 : i32
    return %arg0, %c0_i32 : i32, i32
  }
}

</mosaic_0001>

<bundles_post_ra>
// kernel: tpu_custom_call.1
= control target key start
LH: loop header
LB: loop body
LE: loop exit
PB: predicated region body
PF: predicated region fallthrough
CT: control target
= control target key end

     0   :  { %vm60_vm0 = vcmask 818176   ;;  %s1535_s0 = inlined_call_operand.vmem [shape: f32[128,100], index: 0, kind: input, shape index: {}]   ;;  %s1536_s1 = inlined_call_operand.vmem [shape: f32[100,32], index: 1, kind: input, shape index: {}]   ;;  %s1537_s2 = inlined_call_operand.vmem [shape: f32[1,32], index: 2, kind: input, shape index: {}]   ;;  %s1538_s3 = inlined_call_operand.vmem [shape: f32[12,384], index: 3, kind: input, shape index: {}]   ;;  %s1539_s4 = inlined_call_operand.vmem [shape: f32[30,512], index: 4, kind: input, shape index: {}]   ;;  %s1540_s5 = inlined_call_operand.vmem [shape: f32[12,512], index: 5, kind: input, shape index: {}]   ;;  %s1541_s6 = inlined_call_operand.hbm [shape: f32[12,512], index: 6, kind: output, shape index: {}]  }
   0x1   :  { %v40_v0 = vld [vmem:[%s1536_s1] sm:$0xff]  ;;  %v41_v1 = vld [vmem:[%s1536_s1 + $0x8] sm:$0xff]  ;;  %v42_v2 = vld [vmem:[%s1536_s1 + $0x10] sm:$0xff] }
   0x2   :  { %v992_v3 = vpack.c.bf16 %v41_v1, %v40_v0  ;;  %v43_v4 = vld [vmem:[%s1536_s1 + $0x18] sm:$0xff]  ;;  %v44_v6 = vld [vmem:[%s1536_s1 + $0x20] sm:$0xff]  ;;  %v45_v7 = vld [vmem:[%s1536_s1 + $0x28] sm:$0xff] }
   0x3   :  { %v996_v5 = vpack.c.bf16 %v43_v4, %v42_v2  ;;  %v24_v8 = vld [vmem:[%s1535_s0] sm:$0xff]  ;;  %v1000_v9 = vpack.c.bf16 %v45_v7, %v44_v6  ;;  %v46_v10 = vld [vmem:[%s1536_s1 + $0x30] sm:$0xff]  ;;  %v47_v11 = vld [vmem:[%s1536_s1 + $0x38] sm:$0xff] }
   0x4   :  { %993 = vmatprep.subr.bf16.mxu0 %v992_v3  ;;  %933 = vmatprep.mubr.msk.f32.mxu0 %vm60_vm0, %v24_v8  ;;  %v1004_v12 = vpack.c.bf16 %v47_v11, %v46_v10 }
   0x5   :  { %995 = vmatpush3.bf16.msra.mxu0 %v992_v3 }
   0x6   :  { %997 = vmatprep.subr.bf16.mxu0 %v996_v5 }
   0x9   :  { %999 = vmatpush3.bf16.msra.mxu0 %v996_v5 }
   0xa   :  { %1001 = vmatprep.subr.bf16.mxu0 %v1000_v9 }
   0xb   :  { %11 = vsyncpa [#allocation3], 0  ;;  %v48_v13 = vld [vmem:[%s1536_s1 + $0x40] sm:$0xff]  ;;  %v49_v14 = vld [vmem:[%s1536_s1 + $0x48] sm:$0xff]  ;;  %vm109_vm1 = vcmask 1043456   ;;  %vm605_vm2 = vcmask 1045504  }
   0xc   :  { %v1008_v15 = vpack.c.bf16 %v49_v14, %v48_v13  ;;  %v50_v16 = vld [vmem:[%s1536_s1 + $0x50] sm:$0xff]  ;;  %v51_v17 = vld [vmem:[%s1536_s1 + $0x58] sm:$0xff]  ;;  %v52_v19 = vld [vmem:[%s1536_s1 + $0x60] sm:$0xf]  ;;  %vm1213_vm3 = vmmov 1   ;;  %vm598_vm5 = vcmask 244736  }
   0xd   :  { %1003 = vmatpush3.bf16.msra.mxu0 %v1000_v9  ;;  %v1012_v18 = vpack.c.bf16 %v51_v17, %v50_v16  ;;  %v25_v20 = vld [vmem:[%s1535_s0 + $0x8] sm:$0xff]  ;;  %v26_v21 = vld [vmem:[%s1535_s0 + $0x10] sm:$0xff]  ;;  %v27_v22 = vld [vmem:[%s1535_s0 + $0x18] sm:$0xff]  ;;  %s1215_s10 = smov [#allocation2]  }
   0xe   :  { %1005 = vmatprep.subr.bf16.mxu0 %v1004_v12  ;;  %v28_v23 = vld [vmem:[%s1535_s0 + $0x20] sm:$0xff]  ;;  %v29_v24 = vld [vmem:[%s1535_s0 + $0x28] sm:$0xff]  ;;  %v30_v25 = vld [vmem:[%s1535_s0 + $0x30] sm:$0xff]  ;;  %s785_s11 = sshll.u32 %s1215_s10, 4  ;;  %s786_s11 = int_to_ptr.vmem [resolvable:$true] %s785_s11 }
   0xf   :  { %v31_v26 = vld [vmem:[%s1535_s0 + $0x38] sm:$0xff]  ;;  %v32_v27 = vld [vmem:[%s1535_s0 + $0x40] sm:$0xff]  ;;  %v33_v28 = vld [vmem:[%s1535_s0 + $0x48] sm:$0xff]  ;;  %s1187_s12 = scalar_lea.vmem %s786_s11, 1024  ;;  %p1192_p1 = scmp.lt.s32.totalorder %s786_s11, %s786_s11 }
  0x10   :  { %v34_v29 = vld [vmem:[%s1535_s0 + $0x50] sm:$0xff]  ;;  %v35_v30 = vld [vmem:[%s1535_s0 + $0x58] sm:$0xff]  ;;  %v36_v31 = vld [vmem:[%s1535_s0 + $0x60] sm:$0xff]  ;;  %p1188_p0 = scmp.ne.s32.totalorder %s786_s11, %s1187_s12  ;;  %p1193_p2 = scmp.lt.s32.totalorder %s1187_s12, %s1187_s12 }
  0x11   :  { %1007 = vmatpush3.bf16.msra.mxu0 %v1004_v12  ;;  %v37_v32 = vld [vmem:[%s1535_s0 + $0x68] sm:$0xff]  ;;  %v38_v33 = vld [vmem:[%s1535_s0 + $0x70] sm:$0xff]  ;;  %v39_v34 = vld [vmem:[%s1535_s0 + $0x78] sm:$0xff]  ;;  %s1211_s0 = smov 127  }
  0x12   :  { %1009 = vmatprep.subr.bf16.mxu0 %v1008_v15  ;;  %v1359_v35 = vld [vmem:[%s1537_s2] ss:$0 sm:$0xff]  ;;  %s1212_s2 = smov 126   ;;  %vm1459_vm4 = vmpackc.low %vm605_vm2, %vm1213_vm3  ;;  %p1194_p3 = por %p1193_p2, %p1192_p1 }
  0x14   :  { %p1195_p4 = pnand %p1194_p3, %p1188_p0 }
  0x15   :  { %1011 = vmatpush3.bf16.msra.mxu0 %v1008_v15 }
  0x16   :  { %1013 = vmatprep.subr.bf16.mxu0 %v1012_v18 }
  0x19   :  { %1015 = vmatpush3.bf16.msra.mxu0 %v1012_v18 }
  0x1a   :  { %931 = vmatprep.subr.msk.mxu0 %vm109_vm1, %v52_v19 }
  0x1d   :  { %932 = vmatpush3.msk.msra.mxu0 %vm109_vm1, %v52_v19 }
  0x1e   :  { %934 = vmatmul.mubr.msk.f32.vlgmr.msra.gmra.mrb[0].mxu0 %vm60_vm0, %v25_v20 }
  0x1f   :  { %936 = vmatprep.mubr.msk.f32.mxu0 %vm60_vm0, %v26_v21 }
  0x22   :  { %937 = vmatmul.mubr.msk.f32.gmra.mrb[2].mxu0 %vm60_vm0, %v27_v22 }
  0x23   :  { %939 = vmatprep.mubr.msk.f32.mxu0 %vm60_vm0, %v28_v23 }
  0x26   :  { %940 = vmatmul.mubr.msk.f32.gmra.mrb[4].mxu0 %vm60_vm0, %v29_v24 }
  0x27   :  { %942 = vmatprep.mubr.msk.f32.mxu0 %vm60_vm0, %v30_v25 }
  0x2a   :  { %943 = vmatmul.mubr.msk.f32.gmra.mrb[6].mxu0 %vm60_vm0, %v31_v26 }
  0x2b   :  { %945 = vmatprep.mubr.msk.f32.mxu0 %vm60_vm0, %v32_v27 }
  0x2e   :  { %946 = vmatmul.mubr.msk.f32.gmra.mrb[8].mxu0 %vm60_vm0, %v33_v28 }
  0x2f   :  { %948 = vmatprep.mubr.msk.f32.mxu0 %vm60_vm0, %v34_v29 }
  0x32   :  { %949 = vmatmul.mubr.msk.f32.gmra.mrb[10].mxu0 %vm60_vm0, %v35_v30 }
  0x33   :  { %951 = vmatprep.mubr.msk.f32.mxu0 %vm60_vm0, %v36_v31 }
  0x36   :  { %952 = vmatmul.mubr.msk.f32.gmra.mrb[12].mxu0 %vm60_vm0, %v37_v32 }
  0x37   :  { %954 = vmatprep.mubr.msk.f32.mxu0 %vm60_vm0, %v38_v33 }
  0x3a   :  { %955 = vmatmul.mubr.msk.f32.gmra.mrb[14].mxu0 %vm60_vm0, %v39_v34 }
  0xf1   :  { %v935_v36 = vpop.f32.mrb[0].mxu0 }
  0xf2   :  { %v185_v37 = vadd.f32 %v935_v36, %v1359_v35  ;;  %v179_v38 = vpop.f32.mrb[1].mxu0 }
  0xf3   :  { %v180_v39 = vadd.f32 %v1359_v35, %v179_v38 }
  0xf4   :  { %v259_v40 = vadd.f32 2.0, %v185_v37 }
  0xf5   :  { %v258_v41 = vadd.f32 2.0, %v180_v39  ;;  %v938_v42 = vpop.f32.mrb[2].mxu0 }
  0xf6   :  { %v275_v43 = vmul.f32 0.05, %v259_v40  ;;  %v195_v44 = vadd.f32 %v938_v42, %v1359_v35  ;;  %v189_v45 = vpop.f32.mrb[3].mxu0 }
  0xf7   :  { %v274_v46 = vmul.f32 0.05, %v258_v41  ;;  %v190_v47 = vadd.f32 %v1359_v35, %v189_v45 }
  0xf8   :  { %v291_v48 = vmax.f32 %v275_v43, 0.0  ;;  %v261_v49 = vadd.f32 2.0, %v195_v44 }
  0xf9   :  { %v290_v50 = vmax.f32 %v274_v46, 0.0  ;;  %v260_v51 = vadd.f32 2.0, %v190_v47  ;;  %v941_v52 = vpop.f32.mrb[4].mxu0 }
  0xfa   :  { %v277_v53 = vmul.f32 0.05, %v261_v49  ;;  %v205_v54 = vadd.f32 %v941_v52, %v1359_v35  ;;  %v199_v55 = vpop.f32.mrb[5].mxu0 }
  0xfb   :  { %v276_v56 = vmul.f32 0.05, %v260_v51  ;;  %v200_v57 = vadd.f32 %v1359_v35, %v199_v55  ;;  %v1107_v58 = vpack.i.bf16 %v291_v48, %v290_v50  ;;  %v1367_v61 = vpack.c.bf16 %v291_v48, %v290_v50 }
  0xfc   :  { %v293_v59 = vmax.f32 %v277_v53, 0.0  ;;  %v263_v60 = vadd.f32 2.0, %v205_v54 }
  0xfd   :  { %v292_v62 = vmax.f32 %v276_v56, 0.0  ;;  %v262_v63 = vadd.f32 2.0, %v200_v57  ;;  %v944_v0 = vpop.f32.mrb[6].mxu0  ;;  %1108 = vrot.lane.b32.xlu0 %v1107_v58, %s1211_s0 }
  0xfe   :  { %v279_v1 = vmul.f32 0.05, %v263_v60  ;;  %v215_v2 = vadd.f32 %v944_v0, %v1359_v35  ;;  %v209_v3 = vpop.f32.mrb[7].mxu0 }
  0xff   :  { %v278_v4 = vmul.f32 0.05, %v262_v63  ;;  %v210_v5 = vadd.f32 %v1359_v35, %v209_v3  ;;  %v1117_v6 = vpack.i.bf16 %v293_v59, %v292_v62  ;;  %v1372_v9 = vpack.c.bf16 %v293_v59, %v292_v62  ;;  %v419_v63 = vld [vmem:[%s1538_s3 + $0x8] sm:$0xff] }
 0x100   :  { %v295_v7 = vmax.f32 %v279_v1, 0.0  ;;  %v265_v8 = vadd.f32 2.0, %v215_v2  ;;  %488 = vmatprep.mubr.f32.mxu1 %v419_v63 }
 0x101   :  { %v294_v10 = vmax.f32 %v278_v4, 0.0  ;;  %v264_v11 = vadd.f32 2.0, %v210_v5  ;;  %v947_v12 = vpop.f32.mrb[8].mxu0  ;;  %1118 = vrot.lane.b32.xlu1 %v1117_v6, %s1211_s0  ;;  %1113 = vrot.lane.b32.xlu0 %v1107_v58, %s1212_s2  ;;  %v420_v4 = vld [vmem:[%s1538_s3 + $0x10] sm:$0xff] }
 0x102   :  { %v281_v13 = vmul.f32 0.05, %v265_v8  ;;  %v225_v14 = vadd.f32 %v947_v12, %v1359_v35  ;;  %v219_v15 = vpop.f32.mrb[9].mxu0  ;;  %989 = vmatprep.mubr.f32.mxu0 %v420_v4 }
 0x103   :  { %v280_v16 = vmul.f32 0.05, %v264_v11  ;;  %v220_v17 = vadd.f32 %v1359_v35, %v219_v15  ;;  %v1127_v18 = vpack.i.bf16 %v295_v7, %v294_v10  ;;  %v1378_v21 = vpack.c.bf16 %v295_v7, %v294_v10 }
 0x104   :  { %v297_v19 = vmax.f32 %v281_v13, 0.0  ;;  %v267_v20 = vadd.f32 2.0, %v225_v14 }
 0x105   :  { %v296_v22 = vmax.f32 %v280_v16, 0.0  ;;  %v266_v23 = vadd.f32 2.0, %v220_v17  ;;  %v950_v24 = vpop.f32.mrb[10].mxu0  ;;  %1123 = vrot.lane.b32.xlu1 %v1117_v6, %s1212_s2  ;;  %1128 = vrot.lane.b32.xlu0 %v1127_v18, %s1211_s0 }
 0x106   :  { %v283_v25 = vmul.f32 0.05, %v267_v20  ;;  %v235_v26 = vadd.f32 %v950_v24, %v1359_v35  ;;  %v229_v27 = vpop.f32.mrb[11].mxu0 }
 0x107   :  { %v282_v28 = vmul.f32 0.05, %v266_v23  ;;  %v230_v29 = vadd.f32 %v1359_v35, %v229_v27  ;;  %v1137_v30 = vpack.i.bf16 %v297_v19, %v296_v22  ;;  %v1384_v33 = vpack.c.bf16 %v297_v19, %v296_v22 }
 0x108   :  { %v299_v31 = vmax.f32 %v283_v25, 0.0  ;;  %v269_v32 = vadd.f32 2.0, %v235_v26 }
 0x109   :  { %v298_v34 = vmax.f32 %v282_v28, 0.0  ;;  %v268_v36 = vadd.f32 2.0, %v230_v29  ;;  %v953_v37 = vpop.f32.mrb[12].mxu0  ;;  %1133 = vrot.lane.b32.xlu1 %v1127_v18, %s1212_s2  ;;  %1138 = vrot.lane.b32.xlu0 %v1137_v30, %s1211_s0 }
 0x10a   :  { %v285_v38 = vmul.f32 0.05, %v269_v32  ;;  %v245_v39 = vadd.f32 %v953_v37, %v1359_v35  ;;  %v239_v40 = vpop.f32.mrb[13].mxu0 }
 0x10b   :  { %v284_v41 = vmul.f32 0.05, %v268_v36  ;;  %v240_v42 = vadd.f32 %v1359_v35, %v239_v40  ;;  %v1147_v43 = vpack.i.bf16 %v299_v31, %v298_v34  ;;  %v1390_v46 = vpack.c.bf16 %v299_v31, %v298_v34 }
 0x10c   :  { %v301_v44 = vmax.f32 %v285_v38, 0.0  ;;  %v271_v45 = vadd.f32 2.0, %v245_v39 }
 0x10d   :  { %v300_v47 = vmax.f32 %v284_v41, 0.0  ;;  %v270_v48 = vadd.f32 2.0, %v240_v42  ;;  %v956_v49 = vpop.f32.mrb[14].mxu0  ;;  %1143 = vrot.lane.b32.xlu1 %v1137_v30, %s1212_s2  ;;  %1148 = vrot.lane.b32.xlu0 %v1147_v43, %s1211_s0 }
 0x10e   :  { %v287_v50 = vmul.f32 0.05, %v271_v45  ;;  %v255_v51 = vadd.f32 %v956_v49, %v1359_v35  ;;  %v249_v52 = vpop.f32.mrb[15].mxu0 }
 0x10f   :  { %v286_v53 = vmul.f32 0.05, %v270_v48  ;;  %v250_v54 = vadd.f32 %v1359_v35, %v249_v52  ;;  %v1157_v55 = vpack.i.bf16 %v301_v44, %v300_v47  ;;  %v1396_v58 = vpack.c.bf16 %v301_v44, %v300_v47 }
 0x110   :  { %v303_v56 = vmax.f32 %v287_v50, 0.0  ;;  %v273_v57 = vadd.f32 2.0, %v255_v51 }
 0x111   :  { %v302_v59 = vmax.f32 %v286_v53, 0.0  ;;  %v272_v60 = vadd.f32 2.0, %v250_v54  ;;  %1153 = vrot.lane.b32.xlu1 %v1147_v43, %s1212_s2  ;;  %1158 = vrot.lane.b32.xlu0 %v1157_v55, %s1211_s0 }
 0x112   :  { %v289_v62 = vmul.f32 0.05, %v273_v57 }
 0x113   :  { %v288_v0 = vmul.f32 0.05, %v272_v60  ;;  %v1167_v1 = vpack.i.bf16 %v303_v56, %v302_v59  ;;  %v1403_v2 = vpack.c.bf16 %v303_v56, %v302_v59 }
 0x114   :  { %v305_v35 = vmax.f32 %v289_v62, 0.0 }
 0x115   :  { %v304_v3 = vmax.f32 %v288_v0, 0.0  ;;  %1163 = vrot.lane.b32.xlu1 %v1157_v55, %s1212_s2  ;;  %1168 = vrot.lane.b32.xlu0 %v1167_v1, %s1211_s0  ;;  %v579_v0 = vld [vmem:[%s1539_s4 + $0x28] sm:$0xff] }
 0x117   :  { %v1177_v5 = vpack.i.bf16 %v305_v35, %v304_v3  ;;  %v1410_v6 = vpack.c.bf16 %v305_v35, %v304_v3 }
 0x119   :  { %1173 = vrot.lane.b32.xlu1 %v1167_v1, %s1212_s2  ;;  %1178 = vrot.lane.b32.xlu0 %v1177_v5, %s1211_s0 }
 0x11d   :  { %1183 = vrot.lane.b32.xlu1 %v1177_v5, %s1212_s2 }
 0x16f   :  { %v1109_v7 = vpop.permute.xlu0 %1108 }
 0x170   :  { %v1111_v8 = vunpack.i.h.bf16 %v1109_v7  ;;  %v1110_v10 = vunpack.i.l.bf16 %v1109_v7 }
 0x172   :  { %v1016_v11 = vpack.c.bf16 %v1111_v8, %v1110_v10  ;;  %v574_v10 = vld [vmem:[%s1539_s4] sm:$0xff] }
 0x173   :  { %v1119_v12 = vpop.permute.xlu1 %1118  ;;  %v1114_v13 = vpop.permute.xlu0 %1113 }
 0x174   :  { %v1121_v14 = vunpack.i.h.bf16 %v1119_v12  ;;  %v1120_v15 = vunpack.i.l.bf16 %v1119_v12  ;;  %v1116_v16 = vunpack.i.h.bf16 %v1114_v13  ;;  %v1115_v17 = vunpack.i.l.bf16 %v1114_v13  ;;  %1017 = vmatprep.subr.bf16.mxu1 %v1016_v11  ;;  %v578_v11 = vld [vmem:[%s1539_s4 + $0x20] sm:$0xff] }
 0x175   :  { %1019 = vmatpush3.bf16.msra.mxu1 %v1367_v61 }
 0x176   :  { %v1020_v18 = vpack.c.bf16 %v1121_v14, %v1120_v15  ;;  %v1048_v19 = vpack.c.bf16 %v1116_v16, %v1115_v17  ;;  %v422_v15 = vld [vmem:[%s1538_s3 + $0x20] sm:$0xf]  ;;  %v1082_v16 = vpack.c.bf16 %v578_v11, %v574_v10  ;;  %v423_v17 = vld [vmem:[%s1538_s3 + $0x28] sm:$0xf] }
 0x177   :  { %v1124_v20 = vpop.permute.xlu1 %1123  ;;  %v1129_v22 = vpop.permute.xlu0 %1128 }
 0x178   :  { %v1126_v23 = vunpack.i.h.bf16 %v1124_v20  ;;  %v1125_v24 = vunpack.i.l.bf16 %v1124_v20  ;;  %v1131_v25 = vunpack.i.h.bf16 %v1129_v22  ;;  %v1130_v26 = vunpack.i.l.bf16 %v1129_v22  ;;  %1021 = vmatprep.subr.bf16.mxu1 %v1020_v18  ;;  %1049 = vmatprep.subr.bf16.mxu0 %v1048_v19  ;;  %v583_v18 = vld [vmem:[%s1539_s4 + $0x48] sm:$0xff]  ;;  %v582_v22 = vld [vmem:[%s1539_s4 + $0x40] sm:$0xff] }
 0x179   :  { %1023 = vmatpush3.bf16.msra.mxu1 %v1372_v9  ;;  %1051 = vmatpush3.bf16.msra.mxu0 %v1048_v19  ;;  %v587_v19 = vld [vmem:[%s1539_s4 + $0x68] sm:$0x3f] }
 0x17a   :  { %v1052_v27 = vpack.c.bf16 %v1126_v23, %v1125_v24  ;;  %v1024_v28 = vpack.c.bf16 %v1131_v25, %v1130_v26  ;;  %v1084_v20 = vpack.c.bf16 %v587_v19, %v583_v18  ;;  %v586_v23 = vld [vmem:[%s1539_s4 + $0x60] sm:$0x3f]  ;;  %v577_v26 = vld [vmem:[%s1539_s4 + $0x18] sm:$0xff] }
 0x17b   :  { %v1134_v29 = vpop.permute.xlu1 %1133  ;;  %v1139_v30 = vpop.permute.xlu0 %1138  ;;  %v1087_v25 = vpack.c.bf16 %v586_v23, %v582_v22 }
 0x17c   :  { %v1136_v31 = vunpack.i.h.bf16 %v1134_v29  ;;  %v1135_v32 = vunpack.i.l.bf16 %v1134_v29  ;;  %v1141_v61 = vunpack.i.h.bf16 %v1139_v30  ;;  %v1140_v34 = vunpack.i.l.bf16 %v1139_v30  ;;  %1025 = vmatprep.subr.bf16.mxu1 %v1024_v28  ;;  %1053 = vmatprep.subr.bf16.mxu0 %v1052_v27 }
 0x17d   :  { %1027 = vmatpush3.bf16.msra.mxu1 %v1378_v21  ;;  %1055 = vmatpush3.bf16.msra.mxu0 %v1052_v27  ;;  %v581_v27 = vld [vmem:[%s1539_s4 + $0x38] sm:$0xff]  ;;  %v1214_v29 = vmov 0.0  }
 0x17e   :  { %v1056_v36 = vpack.c.bf16 %v1136_v31, %v1135_v32  ;;  %v1028_v37 = vpack.c.bf16 %v1141_v61, %v1140_v34  ;;  %v1090_v28 = vpack.c.bf16 %v581_v27, %v577_v26  ;;  %v576_v61 = vld [vmem:[%s1539_s4 + $0x10] sm:$0xff] }
 0x17f   :  { %v1144_v38 = vpop.permute.xlu1 %1143  ;;  %v1149_v39 = vpop.permute.xlu0 %1148  ;;  %v580_v34 = vld [vmem:[%s1539_s4 + $0x30] sm:$0xff] }
 0x180   :  { %v1146_v40 = vunpack.i.h.bf16 %v1144_v38  ;;  %v1145_v9 = vunpack.i.l.bf16 %v1144_v38  ;;  %v1151_v41 = vunpack.i.h.bf16 %v1149_v39  ;;  %v1150_v42 = vunpack.i.l.bf16 %v1149_v39  ;;  %1029 = vmatprep.subr.bf16.mxu1 %v1028_v37  ;;  %1057 = vmatprep.subr.bf16.mxu0 %v1056_v36  ;;  %v589_v37 = vld [vmem:[%s1539_s4 + $0x78] sm:$0x3f] }
 0x181   :  { %1031 = vmatpush3.bf16.msra.mxu1 %v1384_v33  ;;  %1059 = vmatpush3.bf16.msra.mxu0 %v1056_v36  ;;  %v585_v36 = vld [vmem:[%s1539_s4 + $0x58] sm:$0xff] }
 0x182   :  { %v1060_v43 = vpack.c.bf16 %v1146_v40, %v1145_v9  ;;  %v1032_v44 = vpack.c.bf16 %v1151_v41, %v1150_v42  ;;  %v1092_v41 = vpack.c.bf16 %v580_v34, %v576_v61 }
 0x183   :  { %v1154_v45 = vpop.permute.xlu1 %1153  ;;  %v1159_v47 = vpop.permute.xlu0 %1158 }
 0x184   :  { %v1156_v48 = vunpack.i.h.bf16 %v1154_v45  ;;  %v1155_v21 = vunpack.i.l.bf16 %v1154_v45  ;;  %v1161_v49 = vunpack.i.h.bf16 %v1159_v47  ;;  %v1160_v50 = vunpack.i.l.bf16 %v1159_v47  ;;  %1033 = vmatprep.subr.bf16.mxu1 %v1032_v44  ;;  %1061 = vmatprep.subr.bf16.mxu0 %v1060_v43  ;;  %v584_v45 = vld [vmem:[%s1539_s4 + $0x50] sm:$0xff] }
 0x185   :  { %1035 = vmatpush3.bf16.msra.mxu1 %v1390_v46  ;;  %1063 = vmatpush3.bf16.msra.mxu0 %v1060_v43  ;;  %v575_v46 = vld [vmem:[%s1539_s4 + $0x8] sm:$0xff]  ;;  %v1094_v44 = vpack.c.bf16 %v589_v37, %v585_v36  ;;  %v588_v47 = vld [vmem:[%s1539_s4 + $0x70] sm:$0x3f] }
 0x186   :  { %v1064_v51 = vpack.c.bf16 %v1156_v48, %v1155_v21  ;;  %v1036_v52 = vpack.c.bf16 %v1161_v49, %v1160_v50  ;;  %v1080_v7 = vpack.c.bf16 %v579_v0, %v575_v46  ;;  %v1097_v21 = vpack.c.bf16 %v588_v47, %v584_v45  ;;  %v590_v49 = vld [vmem:[%s1540_s5] sm:$0xff]  ;;  %v591_v50 = vld [vmem:[%s1540_s5 + $0x8] sm:$0xff] }
 0x187   :  { %v1164_v53 = vpop.permute.xlu1 %1163  ;;  %v1169_v54 = vpop.permute.xlu0 %1168 }
 0x188   :  { %v1166_v55 = vunpack.i.h.bf16 %v1164_v53  ;;  %v1165_v33 = vunpack.i.l.bf16 %v1164_v53  ;;  %v1171_v56 = vunpack.i.h.bf16 %v1169_v54  ;;  %v1170_v57 = vunpack.i.l.bf16 %v1169_v54  ;;  %1037 = vmatprep.subr.bf16.mxu1 %v1036_v52  ;;  %1065 = vmatprep.subr.bf16.mxu0 %v1064_v51 }
 0x189   :  { %1039 = vmatpush3.bf16.msra.mxu1 %v1396_v58  ;;  %1067 = vmatpush3.bf16.msra.mxu0 %v1064_v51 }
 0x18a   :  { %v1068_v59 = vpack.c.bf16 %v1166_v55, %v1165_v33  ;;  %v1040_v60 = vpack.c.bf16 %v1171_v56, %v1170_v57  ;;  %v594_v55 = vld [vmem:[%s1540_s5 + $0x20] sm:$0xf]  ;;  %v595_v33 = vld [vmem:[%s1540_s5 + $0x28] sm:$0xf] }
 0x18b   :  { %v1174_v62 = vpop.permute.xlu1 %1173  ;;  %v1179_v63 = vpop.permute.xlu0 %1178 }
 0x18c   :  { %v1176_v1 = vunpack.i.h.bf16 %v1174_v62  ;;  %v1175_v35 = vunpack.i.l.bf16 %v1174_v62  ;;  %v1181_v3 = vunpack.i.h.bf16 %v1179_v63  ;;  %v1180_v4 = vunpack.i.l.bf16 %v1179_v63  ;;  %1041 = vmatprep.subr.bf16.mxu1 %v1040_v60  ;;  %1069 = vmatprep.subr.bf16.mxu0 %v1068_v59  ;;  %v592_v62 = vld [vmem:[%s1540_s5 + $0x10] sm:$0xff]  ;;  %v593_v63 = vld [vmem:[%s1540_s5 + $0x18] sm:$0xff] }
 0x18d   :  { %1043 = vmatpush3.bf16.msra.mxu1 %v1403_v2  ;;  %1071 = vmatpush3.bf16.msra.mxu0 %v1068_v59  ;;  %v418_v2 = vld [vmem:[%s1538_s3] sm:$0xff] }
 0x18e   :  { %v1072_v58 = vpack.c.bf16 %v1176_v1, %v1175_v35  ;;  %v1044_v5 = vpack.c.bf16 %v1181_v3, %v1180_v4  ;;  %v596_v3 = vld [vmem:[%s1540_s5 + $0x30] sm:$0xf]  ;;  %v597_v4 = vld [vmem:[%s1540_s5 + $0x38] sm:$0xf] }
 0x18f   :  { %v1184_v8 = vpop.permute.xlu1 %1183 }
 0x190   :  { %v1186_v12 = vunpack.i.h.bf16 %v1184_v8  ;;  %v1185_v13 = vunpack.i.l.bf16 %v1184_v8  ;;  %1045 = vmatprep.subr.bf16.mxu1 %v1044_v5  ;;  %1073 = vmatprep.subr.bf16.mxu0 %v1072_v58 }
 0x191   :  { %1047 = vmatpush3.bf16.msra.mxu1 %v1410_v6  ;;  %1075 = vmatpush3.bf16.msra.mxu0 %v1072_v58  ;;  %v421_v6 = vld [vmem:[%s1538_s3 + $0x18] sm:$0xf] }
 0x192   :  { %v1076_v14 = vpack.c.bf16 %v1186_v12, %v1185_v13  ;;  %1081 = vmatprep.subr.bf16.mxu1 %v1080_v7 }
 0x194   :  { %489 = vmatmul.mubr.f32.vlgmr.msra.gmra.mrb[0].mxu1 %v418_v2  ;;  %1077 = vmatprep.subr.bf16.mxu0 %v1076_v14 }
 0x195   :  { %1079 = vmatpush3.bf16.msra.mxu0 %v1076_v14  ;;  %493 = vmatprep.mubr.f32.mxu1 %v422_v15 }
 0x196   :  { %1083 = vmatpush1.bf16.msra.mxu1 %v1082_v16 }
 0x197   :  { %1086 = vmatprep.subr.msk.bf16.mxu1 %vm1459_vm4, %v1084_v20 }
 0x198   :  { %494 = vmatmul.mubr.f32.gmra.mrb[2].mxu1 %v421_v6  ;;  %990 = vmatmul.mubr.f32.vlgmr.msra.gmra.mrb[16].mxu0 %v423_v17 }
 0x199   :  { %682 = vmatprep.mubr.f32.mxu1 %v1214_v29 }
 0x19a   :  { %1089 = vmatpush1.bf16.msk.msra.mxu1 %vm1459_vm4, %v1087_v25 }
 0x19b   :  { %1091 = vmatprep.subr.bf16.mxu1 %v1090_v28 }
 0x267   :  { %v883_v30 = vpop.f32.mrb[0].mxu1 }
 0x268   :  { %v884_v31 = vpop.f32.mrb[1].mxu1 }
 0x269   :  { %v885_v32 = vadd.f32 %v884_v31, %v883_v30 }
 0x26b   :  { %v886_v38 = vpop.f32.mrb[2].mxu1  ;;  %v991_v39 = vpop.f32.mrb[16].mxu0 }
 0x26c   :  { %v887_v40 = vpop.f32.mrb[3].mxu1  ;;  %v565_v9 = vpop.f32.mrb[17].mxu0 }
 0x26d   :  { %v888_v42 = vadd.f32 %v887_v40, %v886_v38  ;;  %v566_v43 = vadd.f32 %v885_v32, %v565_v9 }
 0x26f   :  { %v571_v48 = vadd.f32 %v991_v39, %v888_v42  ;;  %816 = vmatmul.mubr.msk.f32.vlgmr.msra.gmra.mrb[4].mxu1 %vm598_vm5, %v566_v43 }
 0x270   :  { %1093 = vmatpush1.bf16.msra.mxu1 %v1092_v41  ;;  %688 = vmatprep.mubr.f32.mxu1 %v1214_v29 }
 0x271   :  { %1096 = vmatprep.subr.msk.bf16.mxu1 %vm1459_vm4, %v1094_v44 }
 0x273   :  { %817 = vmatmul.mubr.msk.f32.gmra.mrb[6].mxu1 %vm598_vm5, %v571_v48 }
 0x274   :  { %1099 = vmatpush1.bf16.msk.msra.mxu1 %vm1459_vm4, %v1097_v21  ;;  %759 = vmatprep.mubr.f32.mxu1 %v1214_v29 }
 0x277   :  { %820 = vmatmul.mubr.msk.f32.vlgmr.msra.gmra.mrb[8].mxu1 %vm598_vm5, %v566_v43 }
 0x278   :  { %765 = vmatprep.mubr.f32.mxu1 %v1214_v29 }
 0x27b   :  { %821 = vmatmul.mubr.msk.f32.gmra.mrb[10].mxu1 %vm598_vm5, %v571_v48 }
 0x342   :  { %v684_v51 = vpop.f32.mrb[4].mxu1 }
 0x343   :  { %v685_v52 = vadd.f32 %v684_v51, %v590_v49  ;;  %v686_v53 = vpop.f32.mrb[5].mxu1 }
 0x344   :  { %v687_v54 = vadd.f32 %v686_v53, %v591_v50 }
 0x345   :  { %772 = vst [vmem:[#allocation2] sm:$0xff] %v685_v52 }
 0x346   :  { %773 = vst [vmem:[#allocation2 + $0x8] sm:$0xff] %v687_v54  ;;  %v690_v56 = vpop.f32.mrb[6].mxu1 }
 0x347   :  { %v691_v57 = vadd.f32 %v690_v56, %v594_v55  ;;  %v692_v59 = vpop.f32.mrb[7].mxu1 }
 0x348   :  { %v693_v60 = vadd.f32 %v692_v59, %v595_v33 }
 0x349   :  { %776 = vst [vmem:[#allocation2 + $0x20] sm:$0xf] %v691_v57 }
 0x34a   :  { %777 = vst [vmem:[#allocation2 + $0x28] sm:$0xf] %v693_v60  ;;  %v761_v46 = vpop.f32.mrb[8].mxu1 }
 0x34b   :  { %v762_v0 = vadd.f32 %v761_v46, %v592_v62  ;;  %v763_v1 = vpop.f32.mrb[9].mxu1 }
 0x34c   :  { %v764_v35 = vadd.f32 %v763_v1, %v593_v63 }
 0x34d   :  { %774 = vst [vmem:[#allocation2 + $0x10] sm:$0xff] %v762_v0 }
 0x34e   :  { %775 = vst [vmem:[#allocation2 + $0x18] sm:$0xff] %v764_v35  ;;  %v767_v58 = vpop.f32.mrb[10].mxu1 }
 0x34f   :  { %v768_v5 = vadd.f32 %v767_v58, %v596_v3  ;;  %v769_v7 = vpop.f32.mrb[11].mxu1 }
 0x350   :  { %v770_v8 = vadd.f32 %v769_v7, %v597_v4 }
 0x351   :  { %778 = vst [vmem:[#allocation2 + $0x30] sm:$0xf] %v768_v5 }
 0x352   :  { %779 = vst [vmem:[#allocation2 + $0x38] sm:$0xf] %v770_v8 }
 0x353   :  { %1198 = shalt.err (!%p1195_p4)
}
 0x354   :  { %s1199_s5 = scalar_lea.hbm %s1541_s6, 1024 }
 0x355   :  { %p1200_p5 = scmp.ne.s32.totalorder %s1541_s6, %s1199_s5  ;;  %p1203_p6 = scmp.lt.u32.totalorder %s1199_s5, %s1541_s6 }
 0x357   :  { %p1205_p7 = pnand %p1203_p6, %p1200_p5 }
 0x359   :  { %1208 = shalt.err (!%p1205_p7)
}
 0x35a   :  { %s1216_s19 = smov 512   ;;  %s1217_s20 = smov 32  }
 0x35b   :  { %791 = dma.vmem_to_hbm [thread:$0]  %s786_s11, 1024, %s1541_s6, [#allocation3], %s1216_s19, %s1216_s19, %s1217_s20  }
 0x35c   :  { %1209 = dma.done.wait [#allocation3], 1024  }
 0x35d   :  { %1210 = vsyncadd [#allocation3], 4294966272 }
 0x35e   :  { %795 = vsyncpa [#allocation3], 1 }

</bundles_post_ra>
